<compile_context>
chip_gen: v6e
topology: v6e:2x2x1
jax: 0.10.0
libtpu: 0.0.40
codegen_flags: <defaults>
</compile_context>

<pallas_src>
import math

import jax
import jax.numpy as jnp
from jax.experimental import pallas as pl
from jax.experimental.pallas import tpu as pltpu


# -----------------------------------------------------------------------------
# Static (trace-time) helpers.
# -----------------------------------------------------------------------------
def _motion_blur_taps(radius: float, sigma: float, angle_deg: float):
    """Static ((dy, dx), weight) taps for a one-sided directional Gaussian,
    mimicking ImageMagick's motion-blur kernel construction.  Duplicate
    offsets (rounding collisions) are merged."""
    n_taps = max(int(round(radius)) + 1, 1)
    if sigma <= 0.0 or n_taps <= 1:
        return [((0, 0), 1.0)]
    theta = math.radians(angle_deg)
    acc = {}
    for i in range(n_taps):
        dy = int(round(i * math.sin(theta)))
        dx = int(round(i * math.cos(theta)))
        w = math.exp(-(i * i) / (2.0 * sigma * sigma))
        acc[(dy, dx)] = acc.get((dy, dx), 0.0) + w
    total = sum(acc.values())
    return [(off, w / total) for off, w in sorted(acc.items())]


def _vmem_capacity_bytes(default=64 * 1024 * 1024):
    """Physical VMEM capacity; conservative (v7x-sized) default if the query
    is unavailable."""
    try:
        info = pltpu.get_tpu_info()
        cap = getattr(info, "vmem_capacity_bytes", None)
        if cap:
            return int(cap)
    except Exception:
        pass
    return default


def _pick_channels_per_step(B, H, W, Hp, Wp, itemsize, n_acc, budget_bytes):
    """Largest BT (channels per grid step) whose honest per-step VMEM
    footprint fits `budget_bytes`.  BT does NOT have to divide B: the grid
    uses pl.cdiv and Pallas clips the last partial block."""
    per_bt = (
        4 * H * W * itemsize          # 2x input + 2x output (double-buffered)
        + Hp * Wp * itemsize          # halo scratch plane (single-buffered)
        + (n_acc + 2) * H * W * 4     # f32 accumulators + strip/tile temps
    )
    bt = max(1, budget_bytes // max(per_bt, 1))
    bt = min(int(bt), B)
    # Keep the grid >= 2 steps so the "parallel" batch axis can be sharded
    # across v7x's two TensorCores (a 1-step grid leaves one core idle).
    if B >= 2:
        bt = min(bt, -(-B // 2))      # ceil(B / 2)
    return max(1, bt)


# -----------------------------------------------------------------------------
# Kernel.
# -----------------------------------------------------------------------------
def _make_kernel(taps, H, W, py0, pb, px0, pr):
    """Kernel body: build an edge-replicated halo in a VMEM scratch once per
    step, then accumulate the statically unrolled, deduplicated taps.  Taps are
    grouped by dx so each distinct lane offset is sliced once."""
    Hp = H + py0 + pb
    Wp = W + px0 + pr

    by_dx = {}
    for (dy, dx), w in taps:
        by_dx.setdefault(dx, []).append((dy, w))

    # 4 independent partial accumulators: 4 VALU slots, no f32 FMA on
    # v5e/v6e, so independent mul+add chains co-issue and hide VALU latency.
    n_acc = min(4, len(taps))

    def kernel(x_ref, o_ref, pad_ref):
        BT = x_ref.shape[0]
        xv = x_ref[...]                      # single VMEM read of the input block
        xv_f32 = xv.astype(jnp.float32)

        # ---- edge-replicated halo built in VMEM (no extra HBM traffic) ----
        pad_ref[:, py0:py0 + H, px0:px0 + W] = xv
        if py0:   # top rows
            pad_ref[:, 0:py0, px0:px0 + W] = jnp.broadcast_to(
                xv[:, 0:1, :], (BT, py0, W))
        if pb:    # bottom rows
            pad_ref[:, py0 + H:Hp, px0:px0 + W] = jnp.broadcast_to(
                xv[:, H - 1:H, :], (BT, pb, W))
        if px0:   # left cols
            pad_ref[:, py0:py0 + H, 0:px0] = jnp.broadcast_to(
                xv[:, :, 0:1], (BT, H, px0))
        if pr:    # right cols
            pad_ref[:, py0:py0 + H, px0 + W:Wp] = jnp.broadcast_to(
                xv[:, :, W - 1:W], (BT, H, pr))
        # Corner regions exist iff both adjacent pads are nonzero, and are
        # always written in that case -> every scratch byte a tap can read is
        # initialized every grid step.
        if py0 and px0:
            pad_ref[:, 0:py0, 0:px0] = jnp.broadcast_to(
                xv[:, 0:1, 0:1], (BT, py0, px0))
        if py0 and pr:
            pad_ref[:, 0:py0, px0 + W:Wp] = jnp.broadcast_to(
                xv[:, 0:1, W - 1:W], (BT, py0, pr))
        if pb and px0:
            pad_ref[:, py0 + H:Hp, 0:px0] = jnp.broadcast_to(
                xv[:, H - 1:H, 0:1], (BT, pb, px0))
        if pb and pr:
            pad_ref[:, py0 + H:Hp, px0 + W:Wp] = jnp.broadcast_to(
                xv[:, H - 1:H, W - 1:W], (BT, pb, pr))

        # ---- weighted directional accumulation (statically unrolled) ----
        accs = [None] * n_acc
        t = 0
        for dx in sorted(by_dx):
            entries = by_dx[dx]
            x0 = px0 + dx
            need_strip = any(dy != 0 or dx != 0 for dy, _ in entries)
            strip = None
            if need_strip:
                # One lane-offset slice per distinct dx (full height),
                # reused for every dy at this dx (sublane-only shifts below).
                strip = pad_ref[:, :, x0:x0 + W].astype(jnp.float32)
            for dy, w in entries:
                if dy == 0 and dx == 0:
                    tile = xv_f32            # center tap: read input directly
                else:
                    y0 = py0 + dy
                    tile = strip[:, y0:y0 + H, :]
                contrib = jnp.float32(w) * tile
                i = t % n_acc
                accs[i] = contrib if accs[i] is None else accs[i] + contrib
                t += 1

        total = None
        for a in accs:
            if a is None:
                continue
            total = a if total is None else total + a
        o_ref[...] = total.astype(o_ref.dtype)

    return kernel


# -----------------------------------------------------------------------------
# Wrapper.
# -----------------------------------------------------------------------------
def motion_blur(x, *, radius: float, sigma: float, angle: float):
    """Apply directional (motion) blur to an (..., C, H, W) float image batch."""
    assert x.ndim >= 3, "expected (..., C, H, W)"
    H, W = x.shape[-2], x.shape[-1]
    B = 1
    for d in x.shape[:-2]:
        B *= d
    x3 = x.reshape(B, H, W)          # channels are independent -> fold N*C

    taps = _motion_blur_taps(radius, sigma, angle)
    dys = [dy for (dy, _), _ in taps]
    dxs = [dx for (_, dx), _ in taps]
    py0 = max(0, -min(dys))          # halo above
    pb = max(0, max(dys))            # halo below
    px0 = max(0, -min(dxs))          # halo left
    pr = max(0, max(dxs))            # halo right
    Hp, Wp = H + py0 + pb, W + px0 + pr

    itemsize = jnp.dtype(x.dtype).itemsize
    n_acc = min(4, len(taps))

    vmem_cap = _vmem_capacity_bytes()
    # Per-step working-set budget: big (>=1 MiB) blocks reach ~85% of the HBM
    # roofline and amortize the ~0.35us/step overhead; stay well inside
    # physical VMEM (64 MiB on v7x, 128 MiB on v5e/v6e).
    budget = min(16 * 1024 * 1024, vmem_cap // 6)
    BT = _pick_channels_per_step(B, H, W, Hp, Wp, itemsize, n_acc, budget)
    grid = (pl.cdiv(B, BT),)

    # Scoped VMEM limit: above the 16/32 MiB defaults so the larger blocks do
    # not spill, but <= ~3/4 of physical capacity (=> ~48 MiB on v7x).
    vmem_limit = int(min(96 * 1024 * 1024,
                         max(32 * 1024 * 1024, (vmem_cap * 3) // 4)))

    kernel = _make_kernel(taps, H, W, py0, pb, px0, pr)
    cost = pl.CostEstimate(
        flops=2 * len(taps) * B * H * W,
        transcendentals=0,
        bytes_accessed=2 * B * H * W * itemsize,
    )

    out = pl.pallas_call(
        kernel,
        out_shape=jax.ShapeDtypeStruct((B, H, W), x.dtype),
        grid_spec=pltpu.PrefetchScalarGridSpec(
            num_scalar_prefetch=0,
            grid=grid,
            # NOTE: last two block dims equal the full array dims (legal w.r.t.
            # the (8,128) rule).  pl.Buffered(3) on the input is a cheap sweep
            # if profiling ever shows exposed DMA on short grids.
            in_specs=[pl.BlockSpec((BT, H, W), lambda b: (b, 0, 0))],
            out_specs=pl.BlockSpec((BT, H, W), lambda b: (b, 0, 0)),
            scratch_shapes=[pltpu.VMEM((BT, Hp, Wp), x.dtype)],
        ),
        compiler_params=pltpu.CompilerParams(
            dimension_semantics=("parallel",),
            vmem_limit_bytes=vmem_limit,
        ),
        cost_estimate=cost,
    )(x3)
    return out.reshape(x.shape)


# -----------------------------------------------------------------------------
# Pure-JAX reference (edge-clamped directional weighted sum).
# -----------------------------------------------------------------------------
def motion_blur_ref(x, *, radius: float, sigma: float, angle: float):
    H, W = x.shape[-2], x.shape[-1]
    taps = _motion_blur_taps(radius, sigma, angle)
    acc = jnp.zeros(x.shape, jnp.float32)
    for (dy, dx), w in taps:
        rows = jnp.clip(jnp.arange(H) + dy, 0, H - 1)
        cols = jnp.clip(jnp.arange(W) + dx, 0, W - 1)
        shifted = x[..., rows[:, None], cols[None, :]]
        acc = acc + w * shifted.astype(jnp.float32)
    return acc.astype(x.dtype)


if __name__ == "__main__":
    key0, key1 = jax.random.split(jax.random.PRNGKey(0))

    # Case 1: small RGB batch, fixed "module parameters" (radius, sigma, angle).
    x1 = jax.random.uniform(key0, (2, 3, 16, 16), dtype=jnp.float32)
    y1 = jax.block_until_ready(motion_blur(x1, radius=3.0, sigma=1.5, angle=45.0))
    r1 = motion_blur_ref(x1, radius=3.0, sigma=1.5, angle=45.0)
    assert y1.shape == x1.shape and y1.dtype == x1.dtype
    assert float(jnp.max(jnp.abs(y1 - r1))) < 5e-5

    # Case 2: odd spatial dims, B not divisible by BT (exercises the pl.cdiv
    # grid with a clipped last block) and an angle that needs a left halo.
    x2 = jax.random.uniform(key1, (1, 3, 17, 20), dtype=jnp.float32)
    y2 = jax.block_until_ready(motion_blur(x2, radius=4.0, sigma=2.0, angle=110.0))
    r2 = motion_blur_ref(x2, radius=4.0, sigma=2.0, angle=110.0)
    assert y2.shape == x2.shape and y2.dtype == x2.dtype
    assert float(jnp.max(jnp.abs(y2 - r2))) < 5e-5

    print("KERNEL_OK")
</pallas_src>

<mosaic_0001>
module attributes {stable_mosaic.version = 11 : i64} {
  func.func @kernel(%arg0: i32, %arg1: memref<3x16x16xf32, #tpu.memory_space<vmem>>, %arg2: memref<3x16x16xf32, #tpu.memory_space<vmem>>, %arg3: memref<3x18x18xf32, #tpu.memory_space<vmem>>) attributes {dimension_semantics = [#tpu.dimension_semantics<parallel>], iteration_bounds = array<i64: 2>, scalar_prefetch = 0 : i64, scratch_operands = 1 : i64, tpu.core_type = #tpu.core_type<tc>, window_params = [{transform_indices = @transform_0, window_bounds = array<i64: 3, 16, 16>}, {transform_indices = @transform_1, window_bounds = array<i64: 3, 16, 16>}]} {
    %c0 = arith.constant 0 : index
    %c0_0 = arith.constant 0 : index
    %c0_1 = arith.constant 0 : index
    %0 = vector.load %arg1[%c0, %c0_0, %c0_1] : memref<3x16x16xf32, #tpu.memory_space<vmem>>, vector<3x16x16xf32>
    %c0_2 = arith.constant 0 : index
    %c0_3 = arith.constant 0 : index
    %c0_4 = arith.constant 0 : index
    %1 = vector.load %arg3[%c0_2, %c0_3, %c0_4] : memref<3x18x18xf32, #tpu.memory_space<vmem>>, vector<3x16x16xf32>
    tpu.vector_store %arg3[%c0_2, %c0_3, %c0_4], %0 {strides = array<i32>} : memref<3x18x18xf32, #tpu.memory_space<vmem>>, vector<3x16x16xf32>,
    %2 = vector.extract_strided_slice %0 {offsets = [0, 15, 0], sizes = [3, 1, 16], strides = [1, 1, 1]} : vector<3x16x16xf32> to vector<3x1x16xf32>
    %3 = vector.shape_cast %2 : vector<3x1x16xf32> to vector<3x1x16xf32>
    %4 = vector.broadcast %3 : vector<3x1x16xf32> to vector<3x2x16xf32>
    %c0_5 = arith.constant 0 : index
    %c16 = arith.constant 16 : index
    %c0_6 = arith.constant 0 : index
    %5 = vector.load %arg3[%c0_5, %c16, %c0_6] : memref<3x18x18xf32, #tpu.memory_space<vmem>>, vector<3x2x16xf32>
    tpu.vector_store %arg3[%c0_5, %c16, %c0_6], %4 {strides = array<i32>} : memref<3x18x18xf32, #tpu.memory_space<vmem>>, vector<3x2x16xf32>,
    %6 = vector.extract_strided_slice %0 {offsets = [0, 0, 15], sizes = [3, 16, 1], strides = [1, 1, 1]} : vector<3x16x16xf32> to vector<3x16x1xf32>
    %7 = vector.shape_cast %6 : vector<3x16x1xf32> to vector<3x16x1xf32>
    %8 = vector.broadcast %7 : vector<3x16x1xf32> to vector<3x16x2xf32>
    %c0_7 = arith.constant 0 : index
    %c0_8 = arith.constant 0 : index
    %c16_9 = arith.constant 16 : index
    %9 = vector.load %arg3[%c0_7, %c0_8, %c16_9] : memref<3x18x18xf32, #tpu.memory_space<vmem>>, vector<3x16x2xf32>
    tpu.vector_store %arg3[%c0_7, %c0_8, %c16_9], %8 {strides = array<i32>} : memref<3x18x18xf32, #tpu.memory_space<vmem>>, vector<3x16x2xf32>,
    %10 = vector.extract_strided_slice %0 {offsets = [0, 15, 15], sizes = [3, 1, 1], strides = [1, 1, 1]} : vector<3x16x16xf32> to vector<3x1x1xf32>
    %11 = vector.shape_cast %10 : vector<3x1x1xf32> to vector<3x1x1xf32>
    %12 = vector.broadcast %11 : vector<3x1x1xf32> to vector<3x2x2xf32>
    %c0_10 = arith.constant 0 : index
    %c16_11 = arith.constant 16 : index
    %c16_12 = arith.constant 16 : index
    %13 = vector.load %arg3[%c0_10, %c16_11, %c16_12] : memref<3x18x18xf32, #tpu.memory_space<vmem>>, vector<3x2x2xf32>
    tpu.vector_store %arg3[%c0_10, %c16_11, %c16_12], %12 {strides = array<i32>} : memref<3x18x18xf32, #tpu.memory_space<vmem>>, vector<3x2x2xf32>,
    %cst = arith.constant 0.426042259 : f32
    %14 = vector.broadcast %cst : f32 to vector<3x16x16xf32>
    %15 = arith.mulf %14, %0 : vector<3x16x16xf32>
    %c0_13 = arith.constant 0 : index
    %c0_14 = arith.constant 0 : index
    %c1 = arith.constant 1 : index
    %16 = vector.load %arg3[%c0_13, %c0_14, %c1] : memref<3x18x18xf32, #tpu.memory_space<vmem>>, vector<3x18x16xf32>
    %17 = vector.extract_strided_slice %16 {offsets = [0, 1, 0], sizes = [3, 16, 16], strides = [1, 1, 1]} : vector<3x18x16xf32> to vector<3x16x16xf32>
    %cst_15 = arith.constant 0.516299188 : f32
    %18 = vector.broadcast %cst_15 : f32 to vector<3x16x16xf32>
    %19 = arith.mulf %18, %17 : vector<3x16x16xf32>
    %c0_16 = arith.constant 0 : index
    %c0_17 = arith.constant 0 : index
    %c2 = arith.constant 2 : index
    %20 = vector.load %arg3[%c0_16, %c0_17, %c2] : memref<3x18x18xf32, #tpu.memory_space<vmem>>, vector<3x18x16xf32>
    %21 = vector.extract_strided_slice %20 {offsets = [0, 2, 0], sizes = [3, 16, 16], strides = [1, 1, 1]} : vector<3x18x16xf32> to vector<3x16x16xf32>
    %cst_18 = arith.constant 0.0576585494 : f32
    %22 = vector.broadcast %cst_18 : f32 to vector<3x16x16xf32>
    %23 = arith.mulf %22, %21 : vector<3x16x16xf32>
    %24 = arith.addf %15, %19 : vector<3x16x16xf32>
    %25 = arith.addf %24, %23 : vector<3x16x16xf32>
    %c0_19 = arith.constant 0 : index
    %c0_20 = arith.constant 0 : index
    %c0_21 = arith.constant 0 : index
    %26 = vector.load %arg2[%c0_19, %c0_20, %c0_21] : memref<3x16x16xf32, #tpu.memory_space<vmem>>, vector<3x16x16xf32>
    tpu.vector_store %arg2[%c0_19, %c0_20, %c0_21], %25 {strides = array<i32>} : memref<3x16x16xf32, #tpu.memory_space<vmem>>, vector<3x16x16xf32>,
    return
  }
  func.func @transform_0(%arg0: i32) -> (i32, i32, i32) {
    %c0_i32 = arith.constant 0 : i32
    %c0_i32_0 = arith.constant 0 : i32
    %c0_i32_1 = arith.constant 0 : i32
    return %arg0, %c0_i32, %c0_i32_0 : i32, i32, i32
  }
  func.func @transform_1(%arg0: i32) -> (i32, i32, i32) {
    %c0_i32 = arith.constant 0 : i32
    %c0_i32_0 = arith.constant 0 : i32
    %c0_i32_1 = arith.constant 0 : i32
    return %arg0, %c0_i32, %c0_i32_0 : i32, i32, i32
  }
}

</mosaic_0001>

<bundles_post_ra>
// kernel: tpu_custom_call.1
= control target key start
LH: loop header
LB: loop body
LE: loop exit
PB: predicated region body
PF: predicated region fallthrough
CT: control target
= control target key end

     0   :  { %6 = vsyncpa [#allocation4], 0  ;;  %s884_s0 = inlined_call_operand.hbm [shape: f32[6,16,16], index: 0, kind: input, shape index: {}]   ;;  %s885_s1 = inlined_call_operand.hbm [shape: f32[6,16,16], index: 1, kind: output, shape index: {}]  }
   0x1   :  { %8 = vsyncpa [#allocation4 + $0x1], 0 }
   0x2   :  { %9 = vsyncpa [#allocation5], 0 }
   0x3   :  { %11 = vsyncpa [#allocation5 + $0x1], 0  ;;  %s645_s6 = smov 0   ;;  %s647_s7 = smov 0  }
   0x4   :  { %s649_s8 = smov 0   ;;  %s651_s9 = smov 0  }
   0x5 LB: > { %s666_s10 = sadd.s32 4294967295, %s623_s9   ;;  %s451_s11 = sadd.s32 4294967294, %s623_s9   ;;  %s623_s9 = sphi %s651_s9, %s899_s9   ;;  %s619_s8 = sphi %s649_s8, %s898_s8   ;;  %s615_s7 = sphi %s647_s7, %s897_s7   ;;  %s611_s6 = sphi %s645_s6, %s896_s6  }
   0x6   : > { %s670_s12 = sadd.s32 1, %s623_s9   ;;  %s24_s13 = sadd.s32 1, %s619_s8 }
   0x7   : > { %s21_s14 = ssub.s32 %s623_s9, %s670_s12  ;;  %p31_p0 = scmp.ne.s32.totalorder %s619_s8, %s615_s7 }
   0x8   : > { %p22_p1 = scmp.eq.s32.totalorder %s21_s14, 0  ;;  %p32_p2 = scmp.eq.s32.totalorder %s623_s9, 0 }
   0x9   : > { %p37_p3 = scmp.ne.s32.totalorder %s615_s7, %s611_s6  ;;  %p38_p4 = scmp.eq.s32.totalorder %s666_s10, 0 }
   0xa   : > { %s682_s15 = scalar_select %p22_p1, %s619_s8, %s24_s13  }
   0xb   : > { %p33_p5 = por %p32_p2, %p31_p0  ;;  %p684_p6 = por %p38_p4, %p37_p3 }
   0xc   : > { %p61_p7 = scmp.eq.s32.totalorder %s666_s10, 1  ;;  %p67_p8 = scmp.eq.s32.totalorder %s451_s11, 1 }
   0xd   : > { %s888_s16 = scalar_select %p684_p6, 1, 0 }
   0xe   : > { %p487_p10 = scmp.lt.s32.totalorder %s623_s9, 2  ;;  %p691_p11 = por %p61_p7, %p31_p0 }
   0xf   : > { %p695_p12 = por %p67_p8, %p37_p3  ;;  %s87_s19 = sand.u32 1, %s619_s8  }
  0x10   : > { %s889_s17 = scalar_select %p691_p11, 1, 0 }
  0x11   : > { %s890_s18 = scalar_select %p695_p12, 1, 0 }
  0x12   : > { %s465_s20 = smul.u32 768, %s623_s9  ;;  %p706_p13 = pnand %p487_p10, %p33_p5 }
  0x13   : > { %s467_s21 = smul.u32 48, %s87_s19  ;;  %s712_s28 = scalar_lea.sflag [#allocation4], %s87_s19 }
  0x14   : > { %s704_s24 = scalar_lea.hbm %s884_s0, %s465_s20  ;;  %p533_p1 = pneg %p706_p13 }
  0x15   : > { %s91_s26 = scalar_lea.vmem [#allocation3], %s467_s21  ;;  %s531_s29 = scalar_lea.hbm %s704_s24, 768 }
  0x16   : > { %s99_s27 = sshll.u32 %s91_s26, 4  ;;  %p532_p0 = scmp.ne.s32.totalorder %s704_s24, %s531_s29  ;;  %s710_s27 = int_to_ptr.vmem [resolvable:$true] %s99_s27 }
  0x17   : > { %s536_s3 = scalar_lea.hbm %s884_s0, 1536  ;;  %p537_p4 = scmp.lt.s32.totalorder %s704_s24, %s884_s0 }
  0x18   : > { %p534_p2 = pnand %p533_p1, %p532_p0  ;;  %p538_p5 = scmp.lt.s32.totalorder %s536_s3, %s531_s29 }
  0x1a   : > { %p535_p3 = pneg %p534_p2  ;;  %p539_p7 = por %p538_p5, %p537_p4 }
  0x1c   : > { %p540_p8 = pnand %p539_p7, %p535_p3 }
  0x1e   : > { %543 = shalt.err (!%p540_p8)
}
  0x1f   : > { %s544_s11 = scalar_lea.vmem %s710_s27, 768  ;;  %s625_s13 = smov [#allocation3]  }
  0x20   : > { %p545_p10 = scmp.ne.s32.totalorder %s710_s27, %s544_s11  ;;  %s549_s14 = sshll.u32 %s625_s13, 4  ;;  %s550_s14 = int_to_ptr.vmem [resolvable:$false] %s549_s14 }
  0x21   : > { %s551_s19 = scalar_lea.vmem %s550_s14, 1536  ;;  %p552_p2 = scmp.lt.s32.totalorder %s710_s27, %s550_s14 }
  0x22   : > { %p547_p9 = pnand %p545_p10, %p533_p1  ;;  %p553_p12 = scmp.lt.s32.totalorder %s551_s19, %s544_s11 }
  0x24   : > { %p548_p0 = pneg %p547_p9  ;;  %p554_p11 = por %p553_p12, %p552_p2 }
  0x26   : > { %p555_p6 = pnand %p554_p11, %p548_p0 }
  0x28   : > { %558 = shalt.err (!%p555_p6)
}
  0x29   : > { %s626_s20 = smov 128   ;;  %s627_s21 = smov 8  }
  0x2a   : > { %482 = dma.hbm_to_vmem [thread:$0]  (!%p706_p13), %s704_s24, 768, %s710_s27, %s712_s28, %s626_s20, %s626_s20, %s627_s21  }
  0x2b   : > { %p456_p9 = scmp.ge.s32.totalorder %s623_s9, 1  ;;  %p107_p1 = scmp.lt.s32.totalorder %s623_s9, 3 }
  0x2d   : > { %p108_p3 = pnand %p456_p9, %p107_p1 }
  0x2e   : > { %s736_s22 = sand.u32 (!%p108_p3), 1, %s615_s7   ;;  %p892_p6 = scmp.ne.s32.totalorder (!%p108_p3), %s888_s16, 0 }
  0x2f   : > { %111 = sbr.rel (%p108_p3) target bundleno = 386 (0x182), region = 24  ;;  %s114_s26 = scalar_lea.sflag (!%p108_p3), [#allocation4], %s736_s22 }
  0x30   : > { %s468_s23 = smul.u32 (!%p108_p3), 48, %s736_s22 }
  0x32   : > { %s117_s29 = scalar_lea.vmem (!%p108_p3), [#allocation3], %s468_s23 }
  0x34   : > { %602 = dma.done.wait (%p892_p6), %s114_s26, 768  }
  0x35   : > { %604 = vsyncadd (%p892_p6), %s114_s26, 4294966528  ;;  %v628_v0 = vmov 15   ;;  %vm144_vm0 = vcmask 130048   ;;  %v746_v1 = vld [vmem:[%s117_s29 + $0x8] sm:$0xff]  ;;  %v750_v3 = vld [vmem:[%s117_s29 + $0x18] sm:$0xff]  ;;  %s629_s16 = smov 113   ;;  %v151_v10 = vlaneseq }
  0x36   : > { %529 = vset.pattern.permute.xlu1 %v628_v0  ;;  %530 = vset.pattern.permute.xlu0 %v628_v0  ;;  %v748_v2 = vld [vmem:[%s117_s29 + $0x28] sm:$0xff]  ;;  %v204_v4 = vrot.slane %v746_v1, 7  ;;  %v754_v6 = vld [vmem:[%s117_s29] sm:$0xff]  ;;  %146 = vst.msk [vmem:[#allocation2 + $0x8] sm:$0xff] %vm144_vm0, %v746_v1  ;;  %148 = vst.msk [vmem:[#allocation2 + $0x20] sm:$0xff] %vm144_vm0, %v750_v3  ;;  %v205_v9 = vrot.slane %v750_v3, 7 }
  0x37   : > { %v206_v5 = vrot.slane %v748_v2, 7  ;;  %150 = vst.msk [vmem:[#allocation2 + $0x38] sm:$0xff] %vm144_vm0, %v748_v2  ;;  %v762_v7 = vld [vmem:[%s117_s29 + $0x10] sm:$0xff]  ;;  %v764_v8 = vld [vmem:[%s117_s29 + $0x20] sm:$0xff]  ;;  %145 = vst.msk [vmem:[#allocation2] sm:$0xff] %vm144_vm0, %v754_v6  ;;  %v152_v11 = vshrl.u32 %v151_v10, 7 }
  0x38   : > { %147 = vst.msk [vmem:[#allocation2 + $0x18] sm:$0xff] %vm144_vm0, %v762_v7  ;;  %149 = vst.msk [vmem:[#allocation2 + $0x30] sm:$0xff] %vm144_vm0, %v764_v8  ;;  %207 = vrot.lane.b32.xlu0 %v204_v4, %s629_s16  ;;  %vm163_vm1 = vcmask 123904   ;;  %vm197_vm2 = vcmask 146560   ;;  %vm268_vm3 = vcmask 1046528   ;;  %s630_s24 = smov 127  }
  0x39   : > { %211 = vrot.lane.b32.xlu1 %v206_v5, %s629_s16  ;;  %v153_v12 = vsub.s32 7, %v152_v11  ;;  %vm317_vm4 = vcmask 1045504   ;;  %s631_s25 = smov 126   ;;  %vm222_vm5 = vcmask 140416   ;;  %s817_s2 = scalar_lea.vmem [#allocation6], %s468_s23 }
  0x3a   : > { %s378_s3 = sshll.u32 %s817_s2, 4  ;;  %s466_s4 = smul.u32 768, %s666_s10  ;;  %s832_s3 = int_to_ptr.vmem [resolvable:$true] %s378_s3 }
  0x3b   : > { %v154_v13 = vrot.slane %v746_v1, %v153_v12  ;;  %v158_v14 = vrot.slane %v750_v3, %v153_v12  ;;  %v162_v15 = vrot.slane %v748_v2, %v153_v12  ;;  %s364_s14 = scalar_lea.sflag [#allocation5], %s736_s22  ;;  %s559_s19 = scalar_lea.vmem %s832_s3, 768 }
  0x3c   : > { %209 = vrot.lane.b32.xlu0 %v205_v9, %s629_s16  ;;  %s839_s13 = scalar_lea.hbm %s885_s1, %s466_s4  ;;  %p560_p11 = scmp.ne.s32.totalorder %s832_s3, %s559_s19 }
  0x3d   : > { %169 = vperm.xlu1 %529, %v754_v6   ;;  %164 = vst.msk [vmem:[#allocation2 + $0x10] sm:$0x3] %vm163_vm1, %v154_v13  ;;  %165 = vst.msk [vmem:[#allocation2 + $0x28] sm:$0x3] %vm163_vm1, %v158_v14  ;;  %p893_p12 = scmp.ne.s32.totalorder %s889_s17, 0  ;;  %s632_s10 = smov [#allocation6]  }
  0x3e   : > { %166 = vst.msk [vmem:[#allocation2 + $0x40] sm:$0x3] %vm163_vm1, %v162_v15  ;;  %s563_s20 = sshll.u32 %s632_s10, 4  ;;  %s564_s20 = int_to_ptr.vmem [resolvable:$false] %s563_s20 }
  0x3f   : > { %p561_p13 = pnand %p560_p11, %p893_p12  ;;  %s565_s21 = scalar_lea.vmem %s564_s20, 1536 }
  0x40   : > { %174 = vperm.xlu0 %530, %v746_v1   ;;  %p566_p5 = scmp.lt.s32.totalorder %s832_s3, %s564_s20  ;;  %p567_p7 = scmp.lt.s32.totalorder %s565_s21, %s559_s19 }
  0x41   : > { %179 = vperm.xlu1 %529, %v762_v7   ;;  %p562_p4 = pneg %p561_p13 }
  0x42   : > { %p568_p8 = por %p567_p7, %p566_p5 }
  0x44   : > { %189 = vperm.xlu0 %530, %v764_v8   ;;  %p569_p10 = pnand %p568_p8, %p562_p4 }
  0x45   : > { %184 = vperm.xlu1 %529, %v750_v3  }
  0x49   : > { %194 = vperm.xlu1 %529, %v748_v2  }
  0xaa   : > { %v208_v16 = vpop.permute.xlu0 %207 }
  0xab   : > { %469 = vpush %v208_v16  ;;  %v212_v17 = vpop.permute.xlu1 %211 }
  0xae   : > { %v210_v18 = vpop.permute.xlu0 %209 }
  0xaf   : > { %471 = vpush %v210_v18 }
  0xb0   : > { %473 = vpush %v212_v17 }
  0xb8   : > { %v170_v19 = vpop.permute.xlu1 %169 }
  0xb9   : > { %198 = vst.msk [vmem:[#allocation2] sm:$0xff] %vm197_vm2, %v170_v19 }
  0xbb   : > { %v175_v20 = vpop.permute.xlu0 %174 }
  0xbc   : > { %v180_v21 = vpop.permute.xlu1 %179  ;;  %199 = vst.msk [vmem:[#allocation2 + $0x8] sm:$0xff] %vm197_vm2, %v175_v20 }
  0xbd   : > { %200 = vst.msk [vmem:[#allocation2 + $0x18] sm:$0xff] %vm197_vm2, %v180_v21 }
  0xbf   : > { %v190_v23 = vpop.permute.xlu0 %189 }
  0xc0   : > { %v185_v22 = vpop.permute.xlu1 %184  ;;  %v232_v24 = vld [vmem:[#allocation2] sm:$0xff]  ;;  %202 = vst.msk [vmem:[#allocation2 + $0x30] sm:$0xff] %vm197_vm2, %v190_v23 }
  0xc1   : > { %201 = vst.msk [vmem:[#allocation2 + $0x20] sm:$0xff] %vm197_vm2, %v185_v22  ;;  %v241_v25 = vmul.f32 0.5162992, %v232_v24  ;;  %v250_v40 = vmul.f32 0.05765855, %v232_v24 }
  0xc3   : > { %v233_v27 = vld [vmem:[#allocation2 + $0x8] sm:$0xff]  ;;  %v269_v30 = vrot.slane %v241_v25, 1  ;;  %v318_v48 = vrot.slane %v250_v40, 2 }
  0xc4   : > { %v195_v26 = vpop.permute.xlu1 %194  ;;  %v235_v28 = vld [vmem:[#allocation2 + $0x18] sm:$0xff]  ;;  %v242_v29 = vmul.f32 0.5162992, %v233_v27  ;;  %v251_v41 = vmul.f32 0.05765855, %v233_v27 }
  0xc5   : > { %203 = vst.msk [vmem:[#allocation2 + $0x38] sm:$0xff] %vm197_vm2, %v195_v26  ;;  %v244_v31 = vmul.f32 0.5162992, %v235_v28  ;;  %v253_v46 = vmul.f32 0.05765855, %v235_v28 }
  0xc6   : > { %v270_v32 = vrot.slane %v242_v29, 1  ;;  %v319_v49 = vrot.slane %v251_v41, 2  ;;  %v226_v29 = vmul.f32 0.42604226, %v754_v6  ;;  %v227_v41 = vmul.f32 0.42604226, %v746_v1 }
  0xc7   : > { %v238_v34 = vld [vmem:[#allocation2 + $0x30] sm:$0xff]  ;;  %v274_v37 = vrot.slane %v244_v31, 1  ;;  %v323_v52 = vrot.slane %v253_v46, 2 }
  0xc8   : > { %v236_v33 = vld [vmem:[#allocation2 + $0x20] sm:$0xff]  ;;  %v271_v35 = vsel %vm268_vm3, %v269_v30, %v270_v32  ;;  %v247_v38 = vmul.f32 0.5162992, %v238_v34  ;;  %v320_v53 = vsel %vm317_vm4, %v318_v48, %v319_v49  ;;  %v256_v55 = vmul.f32 0.05765855, %v238_v34 }
  0xc9   : > { %v245_v36 = vmul.f32 0.5162992, %v236_v33  ;;  %284 = vrot.lane.b32.xlu0 %v271_v35, %s630_s24  ;;  %v254_v50 = vmul.f32 0.05765855, %v236_v33  ;;  %v230_v35 = vmul.f32 0.42604226, %v764_v8 }
  0xca   : > { %v279_v45 = vrot.slane %v247_v38, 1  ;;  %v328_v58 = vrot.slane %v256_v55, 2  ;;  %v231_v48 = vmul.f32 0.42604226, %v748_v2 }
  0xcb   : > { %v275_v39 = vrot.slane %v245_v36, 1  ;;  %v324_v54 = vrot.slane %v254_v50, 2 }
  0xcc   : > { %v239_v42 = vld [vmem:[#allocation2 + $0x38] sm:$0xff] }
  0xcd   : > { %v276_v43 = vsel %vm268_vm3, %v274_v37, %v275_v39  ;;  %v248_v44 = vmul.f32 0.5162992, %v239_v42  ;;  %v257_v56 = vmul.f32 0.05765855, %v239_v42  ;;  %v325_v57 = vsel %vm317_vm4, %v323_v52, %v324_v54 }
  0xce   : > { %288 = vrot.lane.b32.xlu0 %v276_v43, %s630_s24 }
  0xcf   : > { %v280_v47 = vrot.slane %v248_v44, 1  ;;  %v329_v59 = vrot.slane %v257_v56, 2  ;;  %v229_v44 = vmul.f32 0.42604226, %v750_v3 }
  0xd1   : > { %v281_v51 = vsel %vm268_vm3, %v279_v45, %v280_v47  ;;  %v330_v60 = vsel %vm317_vm4, %v328_v58, %v329_v59 }
  0xd2   : > { %292 = vrot.lane.b32.xlu0 %v281_v51, %s630_s24 }
  0xd6   : > { %333 = vrot.lane.b32.xlu0 %v320_v53, %s631_s25 }
  0xda   : > { %337 = vrot.lane.b32.xlu0 %v325_v57, %s631_s25 }
  0xdc   : > { %s470_s27 = spop %469 }
  0xdd   : > { %v214_v61 = vstv %s470_s27 }
  0xde   : > { %341 = vrot.lane.b32.xlu0 %v330_v60, %s631_s25  ;;  %223 = vst.msk [vmem:[#allocation2 + $0x10] sm:$0x3] %vm222_vm5, %v214_v61 }
  0xe0   : > { %s472_s28 = spop %471 }
  0xe1   : > { %v217_v62 = vstv %s472_s28  ;;  %s474_s30 = spop %473 }
  0xe2   : > { %224 = vst.msk [vmem:[#allocation2 + $0x28] sm:$0x3] %vm222_vm5, %v217_v62  ;;  %v220_v63 = vstv %s474_s30 }
  0xe3   : > { %225 = vst.msk [vmem:[#allocation2 + $0x40] sm:$0x3] %vm222_vm5, %v220_v63 }
  0xe5   : > { %v234_v0 = vld [vmem:[#allocation2 + $0x10] sm:$0x3] }
  0xe6   : > { %v243_v4 = vmul.f32 0.5162992, %v234_v0  ;;  %v252_v17 = vmul.f32 0.05765855, %v234_v0 }
  0xe8   : > { %v272_v5 = vrot.slane %v243_v4, 1  ;;  %v321_v19 = vrot.slane %v252_v17, 2 }
  0xe9   : > { %v237_v9 = vld [vmem:[#allocation2 + $0x28] sm:$0x3] }
  0xea   : > { %v273_v10 = vsel %vm268_vm3, %v270_v32, %v272_v5  ;;  %v246_v11 = vmul.f32 0.5162992, %v237_v9  ;;  %v240_v12 = vld [vmem:[#allocation2 + $0x40] sm:$0x3]  ;;  %v255_v20 = vmul.f32 0.05765855, %v237_v9  ;;  %v322_v21 = vsel %vm317_vm4, %v319_v49, %v321_v19 }
  0xeb   : > { %286 = vrot.lane.b32.xlu1 %v273_v10, %s630_s24  ;;  %v249_v13 = vmul.f32 0.5162992, %v240_v12  ;;  %v258_v23 = vmul.f32 0.05765855, %v240_v12  ;;  %v228_v32 = vmul.f32 0.42604226, %v762_v7 }
  0xec   : > { %v277_v14 = vrot.slane %v246_v11, 1  ;;  %v326_v22 = vrot.slane %v255_v20, 2 }
  0xed   : > { %v282_v16 = vrot.slane %v249_v13, 1  ;;  %v331_v25 = vrot.slane %v258_v23, 2 }
  0xee   : > { %v278_v15 = vsel %vm268_vm3, %v275_v39, %v277_v14  ;;  %v327_v24 = vsel %vm317_vm4, %v324_v54, %v326_v22 }
  0xef   : > { %290 = vrot.lane.b32.xlu1 %v278_v15, %s630_s24  ;;  %v283_v18 = vsel %vm268_vm3, %v280_v47, %v282_v16  ;;  %v332_v26 = vsel %vm317_vm4, %v329_v59, %v331_v25 }
  0xf3   : > { %294 = vrot.lane.b32.xlu1 %v283_v18, %s630_s24 }
  0xf7   : > { %335 = vrot.lane.b32.xlu1 %v322_v21, %s631_s25 }
  0xfb   : > { %339 = vrot.lane.b32.xlu1 %v327_v24, %s631_s25 }
  0xff   : > { %343 = vrot.lane.b32.xlu1 %v332_v26, %s631_s25 }
 0x13b   : > { %v285_v27 = vpop.permute.xlu0 %284 }
 0x13c   : > { %v302_v31 = vadd.f32 %v285_v27, %v226_v29 }
 0x140   : > { %v289_v28 = vpop.permute.xlu0 %288 }
 0x141   : > { %v304_v34 = vadd.f32 %v289_v28, %v228_v32 }
 0x144   : > { %v293_v30 = vpop.permute.xlu0 %292 }
 0x145   : > { %v306_v38 = vadd.f32 %v293_v30, %v230_v35 }
 0x148   : > { %v334_v33 = vpop.permute.xlu0 %333 }
 0x149   : > { %v351_v36 = vadd.f32 %v334_v33, %v302_v31 }
 0x14b   : > { %357 = vst.msk [vmem:[%s817_s2] sm:$0xff] %vm144_vm0, %v351_v36 }
 0x14c   : > { %v338_v37 = vpop.permute.xlu0 %337 }
 0x14d   : > { %v353_v6 = vadd.f32 %v338_v37, %v304_v34 }
 0x14f   : > { %359 = vst.msk [vmem:[%s817_s2 + $0x10] sm:$0xff] %vm144_vm0, %v353_v6 }
 0x150   : > { %v342_v7 = vpop.permute.xlu0 %341 }
 0x151   : > { %v355_v39 = vadd.f32 %v342_v7, %v306_v38 }
 0x153   : > { %361 = vst.msk [vmem:[%s817_s2 + $0x20] sm:$0xff] %vm144_vm0, %v355_v39 }
 0x15d   : > { %v287_v8 = vpop.permute.xlu1 %286 }
 0x15e   : > { %v303_v43 = vadd.f32 %v287_v8, %v227_v41 }
 0x161   : > { %v291_v40 = vpop.permute.xlu1 %290 }
 0x162   : > { %v305_v47 = vadd.f32 %v291_v40, %v229_v44 }
 0x165   : > { %v295_v42 = vpop.permute.xlu1 %294 }
 0x166   : > { %v307_v1 = vadd.f32 %v295_v42, %v231_v48 }
 0x169   : > { %v336_v45 = vpop.permute.xlu1 %335 }
 0x16a   : > { %v352_v46 = vadd.f32 %v336_v45, %v303_v43 }
 0x16c   : > { %358 = vst.msk [vmem:[%s817_s2 + $0x8] sm:$0xff] %vm144_vm0, %v352_v46 }
 0x16d   : > { %v340_v49 = vpop.permute.xlu1 %339 }
 0x16e   : > { %v354_v50 = vadd.f32 %v340_v49, %v305_v47 }
 0x170   : > { %360 = vst.msk [vmem:[%s817_s2 + $0x18] sm:$0xff] %vm144_vm0, %v354_v50 }
 0x171   : > { %v344_v3 = vpop.permute.xlu1 %343 }
 0x172   : > { %v356_v51 = vadd.f32 %v344_v3, %v307_v1 }
 0x174   : > { %362 = vst.msk [vmem:[%s817_s2 + $0x28] sm:$0xff] %vm144_vm0, %v356_v51 }
 0x175   : > { %572 = shalt.err (!%p569_p10)
}
 0x176   : > { %s573_s23 = scalar_lea.hbm %s839_s13, 768  ;;  %s577_s16 = scalar_lea.hbm %s885_s1, 1536 }
 0x177   : > { %p574_p0 = scmp.ne.s32.totalorder %s839_s13, %s573_s23  ;;  %p578_p1 = scmp.lt.s32.totalorder %s839_s13, %s885_s1 }
 0x178   : > { %p579_p3 = scmp.lt.s32.totalorder %s577_s16, %s573_s23 }
 0x179   : > { %p575_p2 = pnand %p574_p0, %p893_p12 }
 0x17a   : > { %p580_p6 = por %p579_p3, %p578_p1 }
 0x17b   : > { %p576_p9 = pneg %p575_p2 }
 0x17d   : > { %p581_p11 = pnand %p580_p6, %p576_p9 }
 0x17f   : > { %584 = shalt.err (!%p581_p11)
}
 0x180   : > { %s633_s27 = smov 128   ;;  %s634_s28 = smov 8  }
 0x181   : > { %477 = dma.vmem_to_hbm [thread:$0]  (%p893_p12), %s832_s3, 768, %s839_s13, %s364_s14, %s633_s27, %s633_s27, %s634_s28  }
 0x182 PF: > { %s393_s30 = sand.u32 1, %s611_s6   ;;  %p894_p13 = scmp.ne.s32.totalorder %s890_s18, 0 }
 0x183   : > { %p895_p4 = scmp.ge.s32.totalorder %s623_s9, 2  ;;  %s394_s2 = scalar_lea.sflag [#allocation5], %s393_s30 }
 0x185   : > { %p484_p5 = pnand %p895_p4, %p894_p13 }
 0x187   : > { %p485_p7 = pneg %p484_p5 }
 0x189   : > { %606 = dma.done.wait (%p485_p7), %s394_s2, 768  }
 0x18a   : > { %608 = vsyncadd (%p485_p7), %s394_s2, 4294966528  ;;  %p14_p8 = scmp.ge.s32.totalorder %s670_s12, 4   ;;  %s896_s6 = smov %s615_s7 }
 0x18b   : > { %s897_s7 = smov %s619_s8  ;;  %s898_s8 = smov %s682_s15 }
 0x18c   : > { %s899_s9 = smov %s670_s12  ;;  %16 = sbr.rel (!%p14_p8) target bundleno = 5 (0x5), region = 69 }
 0x191   :  { %399 = vsyncpa [#allocation4], 1 }
 0x192   :  { %401 = vsyncpa [#allocation4 + $0x1], 1 }
 0x193   :  { %402 = vsyncpa [#allocation5], 1 }
 0x194   :  { %404 = vsyncpa [#allocation5 + $0x1], 1 }

</bundles_post_ra>
